<compile_context>
chip_gen: v7x
topology: tpu7x:2x2x1
jax: 0.10.0
libtpu: 0.0.40
codegen_flags: <defaults>
</compile_context>

<pallas_src>
import functools
import math

import numpy as np
import jax
import jax.numpy as jnp
from jax.experimental import pallas as pl
from jax.experimental.pallas import tpu as pltpu

# ----------------------------------------------------------------------------
# SegFormer configuration (fixed by TransEncoder.__init__)
# ----------------------------------------------------------------------------
WIDTHS = [64, 128, 256, 512]
DEPTHS = [3, 4, 6, 3]
NUM_HEADS = [1, 2, 4, 8]
PATCH_SIZES = [7, 3, 3, 3]
OVERLAP_SIZES = [4, 2, 2, 2]
REDUCTION_RATIOS = [8, 4, 2, 1]
MLP_EXPANSIONS = [4, 4, 4, 4]
DECODER_CHANNELS = 128
SCALE_FACTORS = [32, 16, 8, 4]
NUM_CLASSES = 3
IN_CHANNELS = 6
LN_EPS = 1e-5
BN_EPS = 1e-5

ACT_DTYPE = jnp.bfloat16


def _pick_tile(dim, align, max_tile):
    """Largest tile t <= max_tile with t % align == 0 and dim % t == 0.
    Falls back to the full dimension (block dim == array dim is always legal)."""
    if dim % align == 0:
        t = min(max_tile, dim)
        t -= t % align
        while dim % t:
            t -= align
        return t
    return dim


def _gelu_exact_f32(x):
    """Exact (erf-based) GELU; erf via Abramowitz-Stegun 7.1.26 (|err|<1.5e-7,
    well below bf16 resolution).  Uses only exp/mul/add -> safe Mosaic lowering."""
    z = x * 0.7071067811865476
    s = jnp.where(z >= 0, 1.0, -1.0)
    az = jnp.abs(z)
    t = 1.0 / (1.0 + 0.3275911 * az)
    poly = ((((1.061405429 * t - 1.453152027) * t + 1.421413741) * t
             - 0.284496736) * t + 0.254829592) * t
    erf = s * (1.0 - poly * jnp.exp(-az * az))
    return 0.5 * x * (1.0 + erf)


# ----------------------------------------------------------------------------
# Pallas kernel 1: tiled matmul (MXU, bf16 operands / f32 accumulation) with
# optional fused LayerNorm prologue, bias / residual-add / ReLU epilogue.
# The accumulator scratch is skipped when K fits a single tile.
# ----------------------------------------------------------------------------
def _matmul_kernel(nk, has_res, has_ln, act, *refs):
    a_ref, b_ref, bias_ref = refs[0], refs[1], refs[2]
    i = 3
    res_ref = None
    g_ref = be_ref = None
    if has_res:
        res_ref = refs[i]
        i += 1
    if has_ln:
        g_ref, be_ref = refs[i], refs[i + 1]
        i += 2
    o_ref = refs[i]
    i += 1
    acc_ref = refs[i] if nk > 1 else None

    a = a_ref[...]
    if has_ln:
        af = a.astype(jnp.float32)
        mu = jnp.mean(af, axis=-1, keepdims=True)
        var = jnp.mean(jnp.square(af - mu), axis=-1, keepdims=True)
        af = (af - mu) * jax.lax.rsqrt(var + LN_EPS)
        a = (af * g_ref[...] + be_ref[...]).astype(jnp.bfloat16)

    part = jnp.dot(a, b_ref[...], preferred_element_type=jnp.float32)

    def _epilogue(acc):
        out = acc + bias_ref[...]
        if has_res:
            out = out + res_ref[...].astype(jnp.float32)
        if act == "relu":
            out = jnp.maximum(out, 0.0)
        o_ref[...] = out.astype(o_ref.dtype)

    if nk == 1:
        _epilogue(part)
    else:
        @pl.when(pl.program_id(2) == 0)
        def _():
            acc_ref[...] = jnp.zeros_like(acc_ref)

        acc_ref[...] += part

        @pl.when(pl.program_id(2) == nk - 1)
        def _():
            _epilogue(acc_ref[...])


@functools.partial(jax.jit, static_argnames=("act", "out_dtype"))
def matmul_pallas(a, b, bias=None, residual=None, ln=None, act=None,
                  out_dtype=ACT_DTYPE):
    """(M, K) @ (K, N) [+ bias] [+ residual] [relu] -> (M, N) out_dtype.
    `ln=(gamma, beta)` fuses a row-LayerNorm of `a` into the prologue (requires
    the full K in one tile, true for every C<=512 projection here)."""
    M, K = a.shape
    K2, N = b.shape
    assert K == K2
    if a.dtype != jnp.bfloat16:
        a = a.astype(jnp.bfloat16)
    if b.dtype != jnp.bfloat16:
        b = b.astype(jnp.bfloat16)
    if bias is None:
        bias = jnp.zeros((N,), jnp.float32)
    bias2 = bias.reshape(1, N).astype(jnp.float32)

    tm = _pick_tile(M, 16, 512)       # bf16 packs 16 rows / vreg
    tn = _pick_tile(N, 128, 512)
    tk = _pick_tile(K, 128, 512)
    # Keep >= 2 parallel grid steps where possible (v7x has 2 TensorCores).
    if (M // tm) * (N // tn) == 1 and tm % 32 == 0:
        tm //= 2
    nk = K // tk
    has_res = residual is not None
    has_ln = ln is not None
    if has_ln:
        assert nk == 1 and tk == K, "LN fusion needs a single K tile"

    operands = [a, b, bias2]
    if nk == 1:
        grid = (M // tm, N // tn)
        in_specs = [pl.BlockSpec((tm, tk), lambda i, j: (i, 0)),
                    pl.BlockSpec((tk, tn), lambda i, j: (0, j)),
                    pl.BlockSpec((1, tn), lambda i, j: (0, j))]
        if has_res:
            operands.append(residual)
            in_specs.append(pl.BlockSpec((tm, tn), lambda i, j: (i, j)))
        if has_ln:
            g, be = ln
            operands += [g.reshape(1, K).astype(jnp.float32),
                         be.reshape(1, K).astype(jnp.float32)]
            in_specs += [pl.BlockSpec((1, tk), lambda i, j: (0, 0)),
                         pl.BlockSpec((1, tk), lambda i, j: (0, 0))]
        out_specs = pl.BlockSpec((tm, tn), lambda i, j: (i, j))
        scratch = []
        dims = ("parallel", "parallel")
    else:
        grid = (M // tm, N // tn, nk)
        in_specs = [pl.BlockSpec((tm, tk), lambda i, j, k: (i, k)),
                    pl.BlockSpec((tk, tn), lambda i, j, k: (k, j)),
                    pl.BlockSpec((1, tn), lambda i, j, k: (0, j))]
        if has_res:
            operands.append(residual)
            in_specs.append(pl.BlockSpec((tm, tn), lambda i, j, k: (i, j)))
        out_specs = pl.BlockSpec((tm, tn), lambda i, j, k: (i, j))
        scratch = [pltpu.VMEM((tm, tn), jnp.float32)]
        dims = ("parallel", "parallel", "arbitrary")

    kernel = functools.partial(_matmul_kernel, nk, has_res, has_ln, act)
    return pl.pallas_call(
        kernel,
        out_shape=jax.ShapeDtypeStruct((M, N), out_dtype),
        grid_spec=pltpu.PrefetchScalarGridSpec(
            num_scalar_prefetch=0, grid=grid, in_specs=in_specs,
            out_specs=out_specs, scratch_shapes=scratch),
        compiler_params=pltpu.CompilerParams(dimension_semantics=dims),
    )(*operands)


# ----------------------------------------------------------------------------
# Pallas kernel 2: standalone row LayerNorm (channel axis), bf16 in/out,
# f32 statistics, (1, C) affine params.
# ----------------------------------------------------------------------------
def _rownorm_kernel(eps, x_ref, g_ref, b_ref, o_ref):
    x = x_ref[...].astype(jnp.float32)
    mu = jnp.mean(x, axis=-1, keepdims=True)
    var = jnp.mean(jnp.square(x - mu), axis=-1, keepdims=True)
    y = (x - mu) * jax.lax.rsqrt(var + eps) * g_ref[...] + b_ref[...]
    o_ref[...] = y.astype(o_ref.dtype)


@functools.partial(jax.jit, static_argnames=("eps",))
def rownorm_pallas(x, gamma, beta, eps=LN_EPS):
    M, C = x.shape
    tm = _pick_tile(M, 8, 512)
    if M // tm == 1 and tm % 16 == 0:      # >= 2 parallel steps when possible
        tm //= 2
    if x.dtype != jnp.bfloat16:
        x = x.astype(jnp.bfloat16)
    return pl.pallas_call(
        functools.partial(_rownorm_kernel, eps),
        out_shape=jax.ShapeDtypeStruct((M, C), ACT_DTYPE),
        grid_spec=pltpu.PrefetchScalarGridSpec(
            num_scalar_prefetch=0,
            grid=(M // tm,),
            in_specs=[pl.BlockSpec((tm, C), lambda i: (i, 0)),
                      pl.BlockSpec((1, C), lambda i: (0, 0)),
                      pl.BlockSpec((1, C), lambda i: (0, 0))],
            out_specs=pl.BlockSpec((tm, C), lambda i: (i, 0))),
        compiler_params=pltpu.CompilerParams(dimension_semantics=("parallel",)),
    )(x, gamma.reshape(1, C).astype(jnp.float32),
      beta.reshape(1, C).astype(jnp.float32))


# ----------------------------------------------------------------------------
# Pallas kernel 3: multi-head attention core.  Grid over batch; heads are
# static lane slices of the (Lq, C) / (Lkv, 2C) blocks; output is a lane-dense
# (1, Lq, C) block with heads concatenated along channels (no transposes).
# The 1/sqrt(Dh) scale is folded into Wq/bq outside the kernel.
# ----------------------------------------------------------------------------
def _mha_kernel(num_heads, q_ref, kv_ref, o_ref):
    C = q_ref.shape[-1]
    Dh = C // num_heads
    q = q_ref[0]                    # (Lq, C)  bf16
    kv = kv_ref[0]                  # (Lkv, 2C) bf16
    for h in range(num_heads):
        qh = q[:, h * Dh:(h + 1) * Dh]
        kh = kv[:, h * Dh:(h + 1) * Dh]
        vh = kv[:, C + h * Dh:C + (h + 1) * Dh]
        s = jax.lax.dot_general(qh, kh, (((1,), (1,)), ((), ())),
                                preferred_element_type=jnp.float32)  # (Lq, Lkv)
        m = jnp.max(s, axis=-1, keepdims=True)
        p = jnp.exp(s - m)
        inv = pl.reciprocal(jnp.sum(p, axis=-1, keepdims=True), approx=True)
        p = (p * inv).astype(jnp.bfloat16)
        oh = jnp.dot(p, vh, preferred_element_type=jnp.float32)      # (Lq, Dh)
        o_ref[0, :, h * Dh:(h + 1) * Dh] = oh.astype(o_ref.dtype)


@functools.partial(jax.jit, static_argnames=("num_heads",))
def attention_pallas(q, kv, num_heads):
    """q: (B, Lq, C), kv: (B, Lkv, 2C) bf16 -> (B, Lq, C) bf16."""
    B, Lq, C = q.shape
    Lkv = kv.shape[1]
    # TODO(synk): flash-style Lkv tiling (online softmax) so VMEM stays bounded
    # on v7x (64 MiB) for very large images; at SR-reduced Lkv it is small here.
    return pl.pallas_call(
        functools.partial(_mha_kernel, num_heads),
        out_shape=jax.ShapeDtypeStruct((B, Lq, C), ACT_DTYPE),
        grid_spec=pltpu.PrefetchScalarGridSpec(
            num_scalar_prefetch=0,
            grid=(B,),
            in_specs=[pl.BlockSpec((1, Lq, C), lambda b: (b, 0, 0)),
                      pl.BlockSpec((1, Lkv, 2 * C), lambda b: (b, 0, 0))],
            out_specs=pl.BlockSpec((1, Lq, C), lambda b: (b, 0, 0))),
        compiler_params=pltpu.CompilerParams(dimension_semantics=("parallel",)),
    )(q.astype(jnp.bfloat16), kv.astype(jnp.bfloat16))


# ----------------------------------------------------------------------------
# Pallas kernel 4: grouped (depthwise) 3x3 conv, groups=C, C -> E*C, with GELU
# fused.  The kernel receives the padded bf16 map once (no 9x im2col copies)
# and forms the 9 shifts with static slices; output is lane-dense (H, W, E*C)
# in e-major channel order, each expansion slice stored directly.
# ----------------------------------------------------------------------------
def _dwconv_kernel(x_ref, w_ref, b_ref, o_ref):
    Hp2, Wp2 = x_ref.shape[1], x_ref.shape[2]
    H, W = Hp2 - 2, Wp2 - 2
    x = x_ref[0].astype(jnp.float32)        # (H+2, W+2, C)
    w = w_ref[...]                          # (9, E, C) f32
    b = b_ref[...]                          # (E, C)    f32
    E, C = b.shape
    for e in range(E):
        acc = x[0:H, 0:W, :] * w[0, e]
        for ky in range(3):
            for kx in range(3):
                if ky == 0 and kx == 0:
                    continue
                acc = acc + x[ky:ky + H, kx:kx + W, :] * w[ky * 3 + kx, e]
        acc = acc + b[e]
        o_ref[0, :, :, e * C:(e + 1) * C] = _gelu_exact_f32(acc).astype(o_ref.dtype)


@jax.jit
def dwconv_pallas(xp, w_dw, b_dw):
    """xp: (B, H+2, W+2, C) padded bf16 map -> (B, H, W, E*C) bf16 (GELU applied)."""
    B, Hp2, Wp2, C = xp.shape
    H, W = Hp2 - 2, Wp2 - 2
    E = w_dw.shape[1]
    # TODO(synk): for very large feature maps, additionally grid over row chunks
    # with a 2-row halo instead of holding the whole padded image per step.
    return pl.pallas_call(
        _dwconv_kernel,
        out_shape=jax.ShapeDtypeStruct((B, H, W, E * C), ACT_DTYPE),
        grid_spec=pltpu.PrefetchScalarGridSpec(
            num_scalar_prefetch=0,
            grid=(B,),
            in_specs=[pl.BlockSpec((1, Hp2, Wp2, C), lambda b: (b, 0, 0, 0)),
                      pl.BlockSpec((9, E, C), lambda b: (0, 0, 0)),
                      pl.BlockSpec((E, C), lambda b: (0, 0))],
            out_specs=pl.BlockSpec((1, H, W, E * C), lambda b: (b, 0, 0, 0))),
        compiler_params=pltpu.CompilerParams(dimension_semantics=("parallel",)),
    )(xp.astype(jnp.bfloat16), w_dw.astype(jnp.float32), b_dw.astype(jnp.float32))


# ----------------------------------------------------------------------------
# Pallas kernel 5: final combine clamp(residual*strength + host, 0, 1);
# strength_factor arrives as an SMEM scalar (no recompile per value).
# ----------------------------------------------------------------------------
def _combine_kernel(sf_ref, res_ref, host_ref, o_ref):
    o_ref[...] = jnp.clip(res_ref[...] * sf_ref[0] + host_ref[...], 0.0, 1.0)


@jax.jit
def combine_pallas(residual, host, strength_factor):
    B, C, H, W = residual.shape
    r = residual.reshape(B * C, H * W).astype(jnp.float32)
    h = host.reshape(B * C, H * W).astype(jnp.float32)
    sf = jnp.asarray(strength_factor, jnp.float32).reshape(1)
    out = pl.pallas_call(
        _combine_kernel,
        out_shape=jax.ShapeDtypeStruct(r.shape, jnp.float32),
        in_specs=[pl.BlockSpec(memory_space=pltpu.MemorySpace.SMEM),
                  pl.BlockSpec(memory_space=pltpu.MemorySpace.VMEM),
                  pl.BlockSpec(memory_space=pltpu.MemorySpace.VMEM)],
        out_specs=pl.BlockSpec(memory_space=pltpu.MemorySpace.VMEM),
    )(sf, r, h)
    return out.reshape(B, C, H, W)


# ----------------------------------------------------------------------------
# NHWC glue built on the kernels above (activations are bf16 throughout)
# ----------------------------------------------------------------------------
def conv2d_nhwc(x, w_mat, bias, ksize, stride, padding):
    """PyTorch-style Conv2d on NHWC bf16 input via im2col + Pallas matmul."""
    B, H, W, C = x.shape
    KH = KW = ksize
    Ho = (H + 2 * padding - KH) // stride + 1
    Wo = (W + 2 * padding - KW) // stride + 1
    if KH == 1 and stride == 1 and padding == 0:
        out = matmul_pallas(x.reshape(B * H * W, C), w_mat, bias)
        return out.reshape(B, H, W, -1)
    if padding == 0 and KH == stride and H % KH == 0 and W % KW == 0:
        # Non-overlapping patches (sequence-reduction conv): pure reshape im2col.
        col = x.reshape(B, Ho, KH, Wo, KW, C).transpose(0, 1, 3, 2, 4, 5)
        col = col.reshape(B * Ho * Wo, KH * KW * C)
    else:
        # TODO(synk): overlapping patch embeds still duplicate KH*KW x, but now
        # in bf16; a direct Pallas conv would remove the remaining amplification.
        xp = jnp.pad(x, ((0, 0), (padding, padding), (padding, padding), (0, 0)))
        cols = [xp[:, ky:ky + stride * (Ho - 1) + 1:stride,
                   kx:kx + stride * (Wo - 1) + 1:stride, :]
                for ky in range(KH) for kx in range(KW)]
        col = jnp.stack(cols, axis=3).reshape(B * Ho * Wo, KH * KW * C)
    out = matmul_pallas(col, w_mat, bias)
    return out.reshape(B, Ho, Wo, -1)


def layernorm_nhwc(x, gamma, beta):
    B, H, W, C = x.shape
    return rownorm_pallas(x.reshape(B * H * W, C), gamma, beta).reshape(B, H, W, C)


def efficient_mha(xn, x_res, p, num_heads, r):
    """EfficientMultiHeadAttention with the residual add fused into the
    output-projection matmul.  xn = ln1(x), x_res = pre-LN residual stream."""
    B, H, W, C = xn.shape
    red = conv2d_nhwc(xn, p["red_w"], p["red_b"], ksize=r, stride=r, padding=0)
    Lkv = red.shape[1] * red.shape[2]
    # Reducer LayerNorm fused into the fused K/V projection prologue.
    kv = matmul_pallas(red.reshape(B * Lkv, C), p["wkv"], p["bkv"],
                       ln=(p["red_ln_g"], p["red_ln_b"]))          # (B*Lkv, 2C)
    Lq = H * W
    q = matmul_pallas(xn.reshape(B * Lq, C), p["wq"], p["bq"])     # scale folded
    o = attention_pallas(q.reshape(B, Lq, C), kv.reshape(B, Lkv, 2 * C), num_heads)
    out = matmul_pallas(o.reshape(B * Lq, C), p["wo"], p["bo"],
                        residual=x_res.reshape(B * Lq, C))
    return out.reshape(B, H, W, C)


def mix_mlp_block(x, bp):
    """ln2 fused into the w1 matmul; GELU fused into the depthwise conv;
    residual add fused into the w3 matmul."""
    B, H, W, C = x.shape
    M = B * H * W
    p = bp["mlp"]
    h1 = matmul_pallas(x.reshape(M, C), p["w1"], p["b1"],
                       ln=(bp["ln2_g"], bp["ln2_b"]))
    xp = jnp.pad(h1.reshape(B, H, W, C), ((0, 0), (1, 1), (1, 1), (0, 0)))
    h2 = dwconv_pallas(xp, p["w2_dw"], p["b2_dw"])      # (B, H, W, E*C), e-major
    E = p["w2_dw"].shape[1]
    out = matmul_pallas(h2.reshape(M, E * C), p["w3"], p["b3"],
                        residual=x.reshape(M, C))
    return out.reshape(B, H, W, C)


def upsample_bilinear_nhwc(x, scale):
    """nn.UpsamplingBilinear2d (align_corners=True) as gather + lerp."""
    B, H, W, C = x.shape
    Ho, Wo = H * scale, W * scale

    def plan(n_in, n_out):
        if n_in == 1 or n_out == 1:
            z = np.zeros(n_out, np.int32)
            return z, z, np.zeros(n_out, np.float32)
        src = np.arange(n_out, dtype=np.float64) * (n_in - 1) / (n_out - 1)
        i0 = np.minimum(np.floor(src).astype(np.int32), n_in - 1)
        i1 = np.minimum(i0 + 1, n_in - 1)
        return i0, i1, (src - i0).astype(np.float32)

    h0, h1, hf = plan(H, Ho)
    w0, w1, wf = plan(W, Wo)
    hf = jnp.asarray(hf, dtype=x.dtype)[None, :, None, None]
    wf = jnp.asarray(wf, dtype=x.dtype)[None, None, :, None]
    xh = x[:, h0] * (1.0 - hf) + x[:, h1] * hf
    return xh[:, :, w0] * (1.0 - wf) + xh[:, :, w1] * wf


# ----------------------------------------------------------------------------
# SegFormer forward (NHWC / bf16 inside)
# ----------------------------------------------------------------------------
def segformer_forward(params, x):
    feats = []
    for si, sp in enumerate(params["stages"]):
        x = conv2d_nhwc(x, sp["patch_w"], None, ksize=PATCH_SIZES[si],
                        stride=OVERLAP_SIZES[si], padding=PATCH_SIZES[si] // 2)
        x = layernorm_nhwc(x, sp["patch_ln_g"], sp["patch_ln_b"])
        for bp in sp["blocks"]:
            y = layernorm_nhwc(x, bp["ln1_g"], bp["ln1_b"])
            x = efficient_mha(y, x, bp["attn"], NUM_HEADS[si], REDUCTION_RATIOS[si])
            x = mix_mlp_block(x, bp)        # StochasticDepth(p=0) is identity
        x = layernorm_nhwc(x, sp["norm_g"], sp["norm_b"])
        feats.append(x)

    # Decoder: 1x1 conv applied BEFORE the bilinear upsample (a pointwise
    # linear conv commutes exactly with align_corners interpolation).
    dec = []
    for f, dp, sfac in zip(feats[::-1], params["decoder"], SCALE_FACTORS):
        B, h, w, cf = f.shape
        g = matmul_pallas(f.reshape(B * h * w, cf), dp["w"], dp["b"])
        g = g.reshape(B, h, w, DECODER_CHANNELS)
        dec.append(upsample_bilinear_nhwc(g, sfac))

    xcat = jnp.concatenate(dec, axis=-1)
    B, Hd, Wd, _ = xcat.shape
    hfe = matmul_pallas(xcat.reshape(B * Hd * Wd, DECODER_CHANNELS * 4),
                        params["head"]["fuse_w"], None,
                        act="relu", out_dtype=jnp.float32)
    # BatchNorm2d in training mode on a fresh module uses batch statistics;
    # fold the resulting per-channel affine exactly into the prediction conv.
    mean = jnp.mean(hfe, axis=0)
    var = jnp.mean(jnp.square(hfe - mean[None, :]), axis=0)   # biased, like torch
    scale = params["head"]["bn_g"] * jax.lax.rsqrt(var + BN_EPS)
    shift = params["head"]["bn_b"] - mean * scale
    w_pred = params["head"]["pred_w"] * scale[:, None]
    b_pred = params["head"]["pred_b"] + shift @ params["head"]["pred_w"]
    out = matmul_pallas(hfe, w_pred, b_pred, out_dtype=jnp.float32)
    return out.reshape(B, Hd, Wd, NUM_CLASSES)


def trans_encoder_forward(params, host, secret, normalize=False, strength_factor=1.0):
    """host/secret: NCHW (B, 3, H, W) in [0, 1] -> container NCHW in [0, 1]."""
    if normalize:
        host = (host - 0.5) * 2.0
        secret = (secret - 0.5) * 2.0
    inputs = jnp.concatenate([host, secret], axis=1)          # NCHW (B, 6, H, W)
    x = jnp.transpose(inputs, (0, 2, 3, 1)).astype(ACT_DTYPE)  # single transpose
    residual = segformer_forward(params, x)                   # NHWC (B, H, W, 3) f32
    residual = jnp.transpose(residual, (0, 3, 1, 2))          # back to NCHW
    return combine_pallas(residual, host, strength_factor)


# ----------------------------------------------------------------------------
# Deterministic parameter initialization (PyTorch layouts) + one-time repacking
# into kernel-friendly layouts (bf16 matmul weights, fused K/V, e-major dwconv,
# attention scale folded into Wq/bq).
# ----------------------------------------------------------------------------
def init_params(key):
    keys = iter(jax.random.split(key, 512))

    def w(shape, std=0.02):
        return jax.random.normal(next(keys), shape, jnp.float32) * std

    zeros = lambda s: jnp.zeros(s, jnp.float32)
    ones = lambda s: jnp.ones(s, jnp.float32)

    stages = []
    in_ch = IN_CHANNELS
    for si in range(4):
        C = WIDTHS[si]
        E = MLP_EXPANSIONS[si]
        r = REDUCTION_RATIOS[si]
        stage = {
            "patch_w": w((C, in_ch, PATCH_SIZES[si], PATCH_SIZES[si])),
            "patch_ln_g": ones((C,)), "patch_ln_b": zeros((C,)),
            "blocks": [],
            "norm_g": ones((C,)), "norm_b": zeros((C,)),
        }
        for _ in range(DEPTHS[si]):
            stage["blocks"].append({
                "ln1_g": ones((C,)), "ln1_b": zeros((C,)),
                "attn": {
                    "red_w": w((C, C, r, r)), "red_b": zeros((C,)),
                    "red_ln_g": ones((C,)), "red_ln_b": zeros((C,)),
                    "Wq": w((C, C)), "Wk": w((C, C)), "Wv": w((C, C)),
                    "bq": zeros((C,)), "bk": zeros((C,)), "bv": zeros((C,)),
                    "Wo": w((C, C)), "bo": zeros((C,)),
                },
                "ln2_g": ones((C,)), "ln2_b": zeros((C,)),
                "mlp": {
                    "w1": w((C, C, 1, 1)), "b1": zeros((C,)),
                    "w2": w((C * E, 1, 3, 3)), "b2": zeros((C * E,)),
                    "w3": w((C, C * E, 1, 1)), "b3": zeros((C,)),
                },
            })
        stages.append(stage)
        in_ch = C

    decoder = [{"w": w((DECODER_CHANNELS, cw, 1, 1)),
                "b": zeros((DECODER_CHANNELS,))} for cw in WIDTHS[::-1]]

    head = {
        "fuse_w": w((DECODER_CHANNELS, DECODER_CHANNELS * 4, 1, 1)),
        "bn_g": ones((DECODER_CHANNELS,)), "bn_b": zeros((DECODER_CHANNELS,)),
        "pred_w": w((NUM_CLASSES, DECODER_CHANNELS, 1, 1)),
        "pred_b": zeros((NUM_CLASSES,)),
    }
    return {"stages": stages, "decoder": decoder, "head": head}


def prepare_params(raw):
    bf = lambda t: t.astype(jnp.bfloat16)

    def conv_mat(wt):      # (O, Cin, KH, KW) -> (KH*KW*Cin, O)
        return jnp.transpose(wt, (2, 3, 1, 0)).reshape(-1, wt.shape[0])

    stages = []
    for si, sp in enumerate(raw["stages"]):
        C = WIDTHS[si]
        E = MLP_EXPANSIONS[si]
        scale = 1.0 / math.sqrt(C // NUM_HEADS[si])
        blocks = []
        for bp in sp["blocks"]:
            a, m = bp["attn"], bp["mlp"]
            blocks.append({
                "ln1_g": bp["ln1_g"], "ln1_b": bp["ln1_b"],
                "attn": {
                    "red_w": bf(conv_mat(a["red_w"])), "red_b": a["red_b"],
                    "red_ln_g": a["red_ln_g"], "red_ln_b": a["red_ln_b"],
                    # fold 1/sqrt(Dh) into the q projection (exact)
                    "wq": bf(a["Wq"].T * scale), "bq": a["bq"] * scale,
                    "wkv": bf(jnp.concatenate([a["Wk"], a["Wv"]], axis=0).T),
                    "bkv": jnp.concatenate([a["bk"], a["bv"]]),
                    "wo": bf(a["Wo"].T), "bo": a["bo"],
                },
                "ln2_g": bp["ln2_g"], "ln2_b": bp["ln2_b"],
                "mlp": {
                    "w1": bf(m["w1"].reshape(C, C).T), "b1": m["b1"],
                    # depthwise 3x3: torch out-channel index is c*E+e
                    "w2_dw": jnp.transpose(m["w2"].reshape(C, E, 9), (2, 1, 0)),  # (9, E, C)
                    "b2_dw": m["b2"].reshape(C, E).T,                             # (E, C)
                    # 1x1 conv consuming the e-major (e*C+c) dwconv layout
                    "w3": bf(jnp.transpose(m["w3"].reshape(C, C, E),
                                           (2, 1, 0)).reshape(E * C, C)),
                    "b3": m["b3"],
                },
            })
        stages.append({
            "patch_w": bf(conv_mat(sp["patch_w"])),
            "patch_ln_g": sp["patch_ln_g"], "patch_ln_b": sp["patch_ln_b"],
            "blocks": blocks,
            "norm_g": sp["norm_g"], "norm_b": sp["norm_b"],
        })

    decoder = [{"w": bf(d["w"].reshape(DECODER_CHANNELS, -1).T), "b": d["b"]}
               for d in raw["decoder"]]
    head = {
        "fuse_w": bf(raw["head"]["fuse_w"].reshape(DECODER_CHANNELS, -1).T),
        "bn_g": raw["head"]["bn_g"], "bn_b": raw["head"]["bn_b"],
        "pred_w": raw["head"]["pred_w"].reshape(NUM_CLASSES, -1).T,   # f32, BN-folded later
        "pred_b": raw["head"]["pred_b"],
    }
    return {"stages": stages, "decoder": decoder, "head": head}


# ----------------------------------------------------------------------------
if __name__ == "__main__":
    key = jax.random.PRNGKey(0)
    kp, kh, ks = jax.random.split(key, 3)
    params = prepare_params(init_params(kp))

    # 32x32 is the smallest spatial size compatible with the /32 pyramid and
    # the decoder's fixed scale_factors [32, 16, 8, 4].
    host = jax.random.uniform(kh, (2, 3, 32, 32), jnp.float32)
    secret = jax.random.uniform(ks, (2, 3, 32, 32), jnp.float32)

    container = trans_encoder_forward(params, host, secret,
                                      normalize=False, strength_factor=1.0)
    container = jax.block_until_ready(container)

    assert container.shape == (2, 3, 32, 32)
    assert container.dtype == jnp.float32
    assert bool(jnp.all(container >= 0.0)) and bool(jnp.all(container <= 1.0))
    print("KERNEL_OK")
</pallas_src>

<mosaic_0001>
module attributes {stable_mosaic.version = 11 : i64} {
  func.func @_matmul_kernel(%arg0: i32, %arg1: i32, %arg2: memref<64x294xbf16, #tpu.memory_space<vmem>>, %arg3: memref<294x64xbf16, #tpu.memory_space<vmem>>, %arg4: memref<1x64xf32, #tpu.memory_space<vmem>>, %arg5: memref<64x64xbf16, #tpu.memory_space<vmem>>) attributes {dimension_semantics = [#tpu.dimension_semantics<parallel>, #tpu.dimension_semantics<parallel>], iteration_bounds = array<i64: 2, 1>, scalar_prefetch = 0 : i64, scratch_operands = 0 : i64, tpu.core_type = #tpu.core_type<tc>, window_params = [{transform_indices = @transform_0, window_bounds = array<i64: 64, 294>}, {transform_indices = @transform_1, window_bounds = array<i64: 294, 64>}, {transform_indices = @transform_2, window_bounds = array<i64: 1, 64>}, {transform_indices = @transform_3, window_bounds = array<i64: 64, 64>}]} {
    %c0 = arith.constant 0 : index
    %c0_0 = arith.constant 0 : index
    %0 = vector.load %arg2[%c0, %c0_0] : memref<64x294xbf16, #tpu.memory_space<vmem>>, vector<64x294xbf16>
    %c0_1 = arith.constant 0 : index
    %c0_2 = arith.constant 0 : index
    %1 = vector.load %arg3[%c0_1, %c0_2] : memref<294x64xbf16, #tpu.memory_space<vmem>>, vector<294x64xbf16>
    %cst = arith.constant dense<0.000000e+00> : vector<64x64xf32>
    %2 = tpu.matmul %0, %1, %cst {dimension_numbers = #tpu.dot_dimension_numbers<[1], [0], [0], [1], [0, 0, 1, 1], [], []>} : vector<64x294xbf16>, vector<294x64xbf16>, vector<64x64xf32> -> vector<64x64xf32>
    %c0_3 = arith.constant 0 : index
    %c0_4 = arith.constant 0 : index
    %3 = vector.load %arg4[%c0_3, %c0_4] : memref<1x64xf32, #tpu.memory_space<vmem>>, vector<1x64xf32>
    %4 = vector.broadcast %3 : vector<1x64xf32> to vector<64x64xf32>
    %5 = arith.addf %2, %4 : vector<64x64xf32>
    %6 = arith.truncf %5 : vector<64x64xf32> to vector<64x64xbf16>
    %c0_5 = arith.constant 0 : index
    %c0_6 = arith.constant 0 : index
    %7 = vector.load %arg5[%c0_5, %c0_6] : memref<64x64xbf16, #tpu.memory_space<vmem>>, vector<64x64xbf16>
    tpu.vector_store %arg5[%c0_5, %c0_6], %6 {strides = array<i32>} : memref<64x64xbf16, #tpu.memory_space<vmem>>, vector<64x64xbf16>,
    return
  }
  func.func @transform_0(%arg0: i32, %arg1: i32) -> (i32, i32) {
    %c0_i32 = arith.constant 0 : i32
    %c0_i32_0 = arith.constant 0 : i32
    return %arg0, %c0_i32 : i32, i32
  }
  func.func @transform_1(%arg0: i32, %arg1: i32) -> (i32, i32) {
    %c0_i32 = arith.constant 0 : i32
    %c0_i32_0 = arith.constant 0 : i32
    return %c0_i32, %arg1 : i32, i32
  }
  func.func @transform_2(%arg0: i32, %arg1: i32) -> (i32, i32) {
    %c0_i32 = arith.constant 0 : i32
    %c0_i32_0 = arith.constant 0 : i32
    return %c0_i32, %arg1 : i32, i32
  }
  func.func @transform_3(%arg0: i32, %arg1: i32) -> (i32, i32) {
    %c0_i32 = arith.constant 0 : i32
    return %arg0, %arg1 : i32, i32
  }
}

</mosaic_0001>

<bundles_post_ra>
// kernel: matmul_pallas.1
= control target key start
LH: loop header
LB: loop body
LE: loop exit
PB: predicated region body
PF: predicated region fallthrough
CT: control target
= control target key end

     0   :  { %s981_s12 = smov 0   ;;  %s983_s13 = smov 0   ;;  %s1114_s0 = inlined_call_operand.vmem [shape: bf16[128,294], index: 0, kind: input, shape index: {}]   ;;  %s1115_s1 = inlined_call_operand.vmem [shape: bf16[294,64], index: 1, kind: input, shape index: {}]   ;;  %s1116_s2 = inlined_call_operand.vmem [shape: f32[1,64], index: 2, kind: input, shape index: {}]   ;;  %s1117_s3 = inlined_call_operand.vmem [shape: bf16[128,64], index: 3, kind: output, shape index: {}]  }
   0x1   :  { %s985_s14 = smov 0  }
   0x2 LB: > { %s25_s15 = sadd.s32 1, %s955_s13  ;;  %p756_p0 = scmp.ge.s32.totalorder %s959_s14, 1  ;;  %s959_s14 = sphi %s985_s14, %s13_s14   ;;  %s955_s13 = sphi %s983_s13, %s1119_s13   ;;  %s951_s12 = sphi %s981_s12, %s1118_s12  }
   0x3   : > { %p27_p1 = scmp.ge.s32.totalorder %s25_s15, 2  ;;  %p170_p2 = scmp.lt.s32.totalorder %s959_s14, 3 }
   0x5   : > { %s1121_s15 = smov (%p27_p1, %s25_s15), 0  ;;  %p171_p3 = pnand %p756_p0, %p170_p2 }
   0x6   : > { %v902_v0 = vld [vmem:[%s1115_s1 + $0x40] sm:$0xff] (!%p171_p3)   ;;  %s757_s20 = sshll.u32 (!%p171_p3), %s951_s12, 3  ;;  %v904_v2 = vld [vmem:[%s1115_s1 + $0x48] sm:$0xff] (!%p171_p3)   ;;  %v906_v4 = vld [vmem:[%s1115_s1 + $0x50] sm:$0xff] (!%p171_p3)   ;;  %vm473_vm0 = vcmask (!%p171_p3), 1042432   ;;  %vm460_vm1 = vcmask (!%p171_p3), 310272  }
   0x7   : > { %174 = sbr.rel (%p171_p3) target bundleno = 287 (0x11f), region = 32  ;;  %v903_v1 = vld [vmem:[%s1115_s1] sm:$0xff] (!%p171_p3)   ;;  %815 = vmatprep.subr.bf16.mxu0 (!%p171_p3), %v902_v0  ;;  %v905_v3 = vld [vmem:[%s1115_s1 + $0x8] sm:$0xff] (!%p171_p3)   ;;  %p206_p4 = scmp.lt.s32.totalorder (!%p171_p3), %s757_s20, 15  ;;  %v907_v5 = vld [vmem:[%s1115_s1 + $0x10] sm:$0xff] (!%p171_p3)   ;;  %vm639_vm2 = vcmask (!%p171_p3), 519168  }
   0x8   : > { %816 = vmatpush3.bf16.msra.mxu0 (!%p171_p3), %v903_v1  ;;  %v908_v6 = vld [vmem:[%s1115_s1 + $0x58] sm:$0xff] (!%p171_p3)   ;;  %v910_v8 = vld [vmem:[%s1115_s1 + $0x60] sm:$0xff] (!%p171_p3)   ;;  %v912_v11 = vld [vmem:[%s1115_s1 + $0x68] sm:$0xff] (!%p171_p3)  }
   0x9   : > { %817 = vmatprep.subr.bf16.mxu0 (!%p171_p3), %v904_v2  ;;  %v909_v7 = vld [vmem:[%s1115_s1 + $0x18] sm:$0xff] (!%p171_p3)   ;;  %v915_v9 = vld [vmem:[%s1115_s1 + $0x80] sm:$0xff] (!%p171_p3)   ;;  %v918_v12 = vld [vmem:[%s1115_s1 + $0x88] sm:$0xff] (!%p171_p3)  }
   0xa   : > { %v911_v10 = vld [vmem:[%s1115_s1 + $0x20] sm:$0xff] (!%p171_p3)   ;;  %862 = vmatprep.subr.bf16.mxu1 (!%p171_p3), %v915_v9  ;;  %v913_v13 = vld [vmem:[%s1115_s1 + $0x28] sm:$0xff] (!%p171_p3)   ;;  %v914_v14 = vld [vmem:[%s1115_s1 + $0x70] sm:$0xff] (!%p171_p3)  }
   0xb   : > { %863 = vmatpush3.bf16.msra.mxu1 (!%p171_p3), %v915_v9  ;;  %v923_v16 = vld [vmem:[%s1115_s1 + $0x90] ss:$0 sps:$4 sm:$0x77] (!%p171_p3)   ;;  %v917_v21 = vld [vmem:[%s1115_s1 + $0x78] sm:$0xff] (!%p171_p3)   ;;  %v761_v38 = vld [vmem:[%s1116_s2] ss:$0 sm:$0xff] (!%p171_p3) }
   0xc   : > { %818 = vmatpush3.bf16.msra.mxu0 (!%p171_p3), %v905_v3  ;;  %864 = vmatprep.subr.bf16.mxu1 (!%p171_p3), %v918_v12  ;;  %v916_v18 = vld [vmem:[%s1115_s1 + $0x30] sm:$0xff] (!%p171_p3)   ;;  %v475_v19 = vsel (!%p171_p3), %vm473_vm0, %v923_v16, 0  ;;  %v919_v23 = vld [vmem:[%s1115_s1 + $0x38] sm:$0xff] (!%p171_p3)  }
   0xd   : > { %819 = vmatprep.subr.bf16.mxu0 (!%p171_p3), %v906_v4 }
   0xe   : > { %s1123_s20 = smov (!%p206_p4, %s757_s20), 15 }
   0xf   : > { %s877_s8 = smul.u32 12, %s1123_s20  ;;  %865 = vmatpush3.bf16.msra.mxu1 %v918_v12  ;;  %s760_s11 = sshll.u32 %s1123_s20, 2 }
  0x10   : > { %820 = vmatpush3.bf16.msra.mxu0 %v907_v5  ;;  %876 = vmatprep.subr.msk.bf16.mxu1 %vm473_vm0, %v923_v16  ;;  %s1087_s17 = scalar_lea.vmem %s1117_s3, %s760_s11 }
  0x11   : > { %821 = vmatprep.subr.bf16.mxu0 %v908_v6  ;;  %s1044_s23 = scalar_lea.vmem %s1114_s0, %s877_s8 }
  0x12   : > { %v922_v15 = vld [vmem:[%s1044_s23 + $0x4] ss:$12 sps:$4 sm:$0xff]   ;;  %v924_v17 = vld [vmem:[%s1044_s23 + $0x8] ss:$12 sps:$4 sm:$0xff]   ;;  %v925_v20 = vld [vmem:[%s1044_s23 + $0x20] ss:$12 sps:$4 sm:$0xff]  }
  0x13   : > { %509 = vmatprep.mubr.bf16.mxu0 %v922_v15  ;;  %868 = vmatprep.mubr.msk.bf16.mxu1 %vm460_vm1, %v924_v17  ;;  %v932_v22 = vld [vmem:[%s1044_s23 + $0x38] ss:$12 sps:$4 sm:$0xff]   ;;  %v920_v24 = vld [vmem:[%s1044_s23] ss:$12 sps:$4 sm:$0xff]   ;;  %v926_v25 = vld [vmem:[%s1044_s23 + $0x1c] ss:$12 sps:$4 sm:$0xff]  }
  0x14   : > { %822 = vmatpush3.bf16.msra.mxu0 %v909_v7  ;;  %867 = vmatpush3.bf16.msra.mxu1 %v475_v19  ;;  %v933_v26 = vld [vmem:[%s1044_s23 + $0x50] ss:$12 sps:$4 sm:$0xff]   ;;  %v928_v27 = vld [vmem:[%s1044_s23 + $0x18] ss:$12 sps:$4 sm:$0xff]   ;;  %v929_v28 = vld [vmem:[%s1044_s23 + $0x34] ss:$12 sps:$4 sm:$0xff]  }
  0x15   : > { %823 = vmatprep.subr.bf16.mxu0 %v910_v8  ;;  %v931_v29 = vld [vmem:[%s1044_s23 + $0x30] ss:$12 sps:$4 sm:$0xff]   ;;  %v934_v30 = vld [vmem:[%s1044_s23 + $0x4c] ss:$12 sps:$4 sm:$0xff]   ;;  %v936_v31 = vld [vmem:[%s1044_s23 + $0x48] ss:$12 sps:$4 sm:$0xff]  }
  0x17   : > { %869 = vmatmul.mubr.msk.bf16.vlgmr.msra.gmra.mrb[0].mxu1 %vm460_vm1, %v925_v20 }
  0x18   : > { %824 = vmatpush3.bf16.msra.mxu0 %v911_v10  ;;  %872 = vmatprep.mubr.msk.bf16.mxu1 %vm460_vm1, %v932_v22 }
  0x19   : > { %825 = vmatprep.subr.bf16.mxu0 %v912_v11 }
  0x1c   : > { %826 = vmatpush3.bf16.msra.mxu0 %v913_v13 }
  0x1d   : > { %827 = vmatprep.subr.bf16.mxu0 %v914_v14 }
  0x1f   : > { %873 = vmatmul.mubr.msk.bf16.gmra.mrb[4].mxu1 %vm460_vm1, %v933_v26 }
  0x20   : > { %828 = vmatpush3.bf16.msra.mxu0 %v916_v18 }
  0x21   : > { %829 = vmatprep.subr.bf16.mxu0 %v917_v21 }
  0x24   : > { %830 = vmatpush3.bf16.msra.mxu0 %v919_v23 }
  0x27   : > { %510 = vmatmul.mubr.bf16.vlgmr.msra.gmra.mrb[0].mxu0 %v920_v24 }
  0x28   : > { %517 = vmatprep.mubr.bf16.mxu0 %v926_v25 }
  0x2f   : > { %518 = vmatmul.mubr.bf16.gmra.mrb[4].mxu0 %v928_v27 }
  0x30   : > { %525 = vmatprep.mubr.bf16.mxu0 %v929_v28 }
  0x37   : > { %526 = vmatmul.mubr.bf16.gmra.mrb[8].mxu0 %v931_v29 }
  0x38   : > { %533 = vmatprep.mubr.bf16.mxu0 %v934_v30 }
  0x3f   : > { %534 = vmatmul.mubr.bf16.gmra.mrb[12].mxu0 %v936_v31 }
  0xea   : > { %v870_v32 = vpop.f32.mrb[0].mxu1 }
  0xeb   : > { %v576_v33 = vpop.f32.mrb[1].mxu1 }
  0xec   : > { %v871_v34 = vpop.f32.mrb[2].mxu1 }
  0xed   : > { %v579_v35 = vpop.f32.mrb[3].mxu1 }
  0xf2   : > { %v874_v39 = vpop.f32.mrb[4].mxu1 }
  0xf3   : > { %v592_v42 = vpop.f32.mrb[5].mxu1 }
  0xf4   : > { %v875_v44 = vpop.f32.mrb[6].mxu1 }
  0xf5   : > { %v595_v47 = vpop.f32.mrb[7].mxu1 }
  0xfa   : > { %v831_v36 = vpop.f32.mrb[0].mxu0 }
  0xfb   : > { %v832_v37 = vpop.f32.mrb[1].mxu0 }
  0xfc   : > { %v833_v40 = vadd.f32 %v832_v37, %v831_v36  ;;  %v834_v41 = vpop.f32.mrb[2].mxu0 }
  0xfd   : > { %v835_v43 = vpop.f32.mrb[3].mxu0 }
  0xfe   : > { %v836_v45 = vadd.f32 %v835_v43, %v834_v41  ;;  %v512_v46 = vadd.f32 %v833_v40, %v761_v38 }
 0x100   : > { %v577_v48 = vadd.f32 %v576_v33, %v512_v46  ;;  %v515_v49 = vadd.f32 %v836_v45, %v761_v38 }
 0x102   : > { %v807_v50 = vpack.c.bf16 %v577_v48, %v577_v48  ;;  %v580_v51 = vadd.f32 %v579_v35, %v515_v49  ;;  %v837_v52 = vpop.f32.mrb[4].mxu0 }
 0x103   : > { %v838_v53 = vpop.f32.mrb[5].mxu0 }
 0x104   : > { %640 = vst.msk [vmem:[%s1087_s17] sm:$0xf] %vm639_vm2, %v807_v50  ;;  %v808_v54 = vpack.c.bf16 %v580_v51, %v580_v51  ;;  %v839_v55 = vadd.f32 %v838_v53, %v837_v52  ;;  %v840_v56 = vpop.f32.mrb[6].mxu0 }
 0x105   : > { %v841_v57 = vpop.f32.mrb[7].mxu0 }
 0x106   : > { %641 = vst.msk [vmem:[%s1087_s17 + $0x4] sm:$0xf] %vm639_vm2, %v808_v54  ;;  %v520_v58 = vadd.f32 %v839_v55, %v761_v38  ;;  %v842_v59 = vadd.f32 %v841_v57, %v840_v56 }
 0x108   : > { %v585_v60 = vadd.f32 %v870_v32, %v520_v58  ;;  %v523_v61 = vadd.f32 %v842_v59, %v761_v38 }
 0x10a   : > { %v809_v62 = vpack.c.bf16 %v585_v60, %v585_v60  ;;  %v588_v63 = vadd.f32 %v871_v34, %v523_v61  ;;  %v843_v0 = vpop.f32.mrb[8].mxu0 }
 0x10b   : > { %v844_v1 = vpop.f32.mrb[9].mxu0 }
 0x10c   : > { %642 = vst.msk [vmem:[%s1087_s17 + $0x8] sm:$0xf] %vm639_vm2, %v809_v62  ;;  %v810_v2 = vpack.c.bf16 %v588_v63, %v588_v63  ;;  %v845_v3 = vadd.f32 %v844_v1, %v843_v0  ;;  %v846_v4 = vpop.f32.mrb[10].mxu0 }
 0x10d   : > { %v847_v5 = vpop.f32.mrb[11].mxu0 }
 0x10e   : > { %643 = vst.msk [vmem:[%s1087_s17 + $0xc] sm:$0xf] %vm639_vm2, %v810_v2  ;;  %v848_v6 = vadd.f32 %v847_v5, %v846_v4  ;;  %v528_v7 = vadd.f32 %v845_v3, %v761_v38 }
 0x110   : > { %v593_v8 = vadd.f32 %v592_v42, %v528_v7  ;;  %v531_v9 = vadd.f32 %v848_v6, %v761_v38 }
 0x112   : > { %v811_v10 = vpack.c.bf16 %v593_v8, %v593_v8  ;;  %v596_v11 = vadd.f32 %v595_v47, %v531_v9  ;;  %v849_v12 = vpop.f32.mrb[12].mxu0 }
 0x113   : > { %v850_v13 = vpop.f32.mrb[13].mxu0 }
 0x114   : > { %644 = vst.msk [vmem:[%s1087_s17 + $0x10] sm:$0xf] %vm639_vm2, %v811_v10  ;;  %v812_v14 = vpack.c.bf16 %v596_v11, %v596_v11  ;;  %v851_v15 = vadd.f32 %v850_v13, %v849_v12  ;;  %v852_v16 = vpop.f32.mrb[14].mxu0 }
 0x115   : > { %v853_v17 = vpop.f32.mrb[15].mxu0 }
 0x116   : > { %645 = vst.msk [vmem:[%s1087_s17 + $0x14] sm:$0xf] %vm639_vm2, %v812_v14  ;;  %v536_v18 = vadd.f32 %v851_v15, %v761_v38  ;;  %v854_v19 = vadd.f32 %v853_v17, %v852_v16 }
 0x118   : > { %v601_v20 = vadd.f32 %v874_v39, %v536_v18  ;;  %v539_v21 = vadd.f32 %v854_v19, %v761_v38 }
 0x11a   : > { %v813_v22 = vpack.c.bf16 %v601_v20, %v601_v20  ;;  %v604_v23 = vadd.f32 %v875_v44, %v539_v21 }
 0x11c   : > { %646 = vst.msk [vmem:[%s1087_s17 + $0x18] sm:$0xf] %vm639_vm2, %v813_v22  ;;  %v814_v24 = vpack.c.bf16 %v604_v23, %v604_v23 }
 0x11e   : > { %647 = vst.msk [vmem:[%s1087_s17 + $0x1c] sm:$0xf] %vm639_vm2, %v814_v24 }
 0x11f PF: > { %s13_s14 = sadd.s32 1, %s959_s14   ;;  %s1118_s12 = smov %s955_s13 }
 0x120   : > { %p10_p5 = scmp.ge.s32.totalorder %s13_s14, 4   ;;  %s1119_s13 = smov %s1121_s15 }
 0x122   :  { %12 = sbr.rel (!%p10_p5) target bundleno = 2 (0x2), region = 68 }

</bundles_post_ra>
